<compile_context>
chip_gen: v7x
topology: tpu7x:2x2x1
jax: 0.10.0
libtpu: 0.0.40
codegen_flags: <defaults>
</compile_context>

<pallas_src>
import numpy as np
import jax
import jax.numpy as jnp
from jax.experimental import pallas as pl
from jax.experimental.pallas import tpu as pltpu


# ------------------------------ helpers -------------------------------------

def _round_up(n: int, m: int) -> int:
    return ((n + m - 1) // m) * m


def _conv_out_len(L_in: int, K: int, stride: int, padding: int) -> int:
    return (L_in + 2 * padding - K) // stride + 1


def _conv_tap_selector(L_in, L_out, K, stride, padding):
    # S[pos, t, k] = 1  iff  pos == t*stride + k - padding  (0 <= pos < L_in)
    pos = np.arange(L_in)[:, None, None]
    t = np.arange(L_out)[None, :, None]
    k = np.arange(K)[None, None, :]
    return jnp.asarray((pos == (t * stride + k - padding)).astype(np.float32))


def _unrolled_conv(w, b, L_in, stride, padding, in_pad, out_pad):
    """Conv1d -> dense GEMM weights.

    Returns W^T of shape (in_pad, out_pad) and bias (1, out_pad) such that
    relu(h_flat @ W^T + bias) equals relu(conv1d(h)) flattened channel-major
    as (C_out*L_out), where h_flat is h flattened as (C_in*L_in) plus zero
    padding columns. SAME-style zero padding is handled by omitting taps that
    fall outside [0, L_in).
    """
    C_out, C_in, K = w.shape
    L_out = _conv_out_len(L_in, K, stride, padding)
    S = _conv_tap_selector(L_in, L_out, K, stride, padding)      # (L_in, L_out, K)
    WT = jnp.einsum("ptk,oik->ipot", S, w).reshape(C_in * L_in, C_out * L_out)
    WT = jnp.pad(WT, ((0, in_pad - C_in * L_in), (0, out_pad - C_out * L_out)))
    b_rep = jnp.pad(jnp.repeat(b, L_out), (0, out_pad - C_out * L_out))
    return WT, b_rep.reshape(1, out_pad), L_out


# ------------------------------ Pallas kernel --------------------------------

def _fused_forward_kernel(x_ref, w1_ref, b1_ref, w2_ref, b2_ref,
                          w3_ref, b3_ref, wl_ref, bl_ref, o_ref):
    # x_ref: (TB, L); wN_ref: (F_{n-1}p, F_np); bN_ref: (1, F_np)
    # wl_ref: (F3p, O); bl_ref: (1, O); o_ref: (TB, O)
    h = jnp.dot(x_ref[...], w1_ref[...], preferred_element_type=jnp.float32)
    h = jnp.maximum(h + b1_ref[...], 0.0)                        # conv1 + ReLU
    h = jnp.dot(h, w2_ref[...], preferred_element_type=jnp.float32)
    h = jnp.maximum(h + b2_ref[...], 0.0)                        # conv2 + ReLU
    h = jnp.dot(h, w3_ref[...], preferred_element_type=jnp.float32)
    h = jnp.maximum(h + b3_ref[...], 0.0)                        # conv3 + ReLU
    out = jnp.dot(h, wl_ref[...], preferred_element_type=jnp.float32)
    o_ref[...] = (out + bl_ref[...]).astype(o_ref.dtype)         # linear


# ------------------------------ model (ConvBase) -----------------------------

def init_conv_base_params(key, output_size, channels=25, linear_in=125):
    """Deterministic init mirroring PyTorch default (uniform +/- 1/sqrt(fan_in))."""
    ks = jax.random.split(key, 8)

    def uinit(k, shape, fan_in):
        bound = 1.0 / jnp.sqrt(float(fan_in))
        return jax.random.uniform(k, shape, jnp.float32, -bound, bound)

    return {
        # Conv1d(1, channels, 5, stride=2, padding=1)
        "w1": uinit(ks[0], (channels, 1, 5), 1 * 5),
        "b1": uinit(ks[1], (channels,), 1 * 5),
        # Conv1d(channels, channels, 3, stride=2, padding=1)
        "w2": uinit(ks[2], (channels, channels, 3), channels * 3),
        "b2": uinit(ks[3], (channels,), channels * 3),
        # Conv1d(channels, channels, 3, stride=2, padding=1)
        "w3": uinit(ks[4], (channels, channels, 3), channels * 3),
        "b3": uinit(ks[5], (channels,), channels * 3),
        # Linear(linear_in, output_size)
        "wl": uinit(ks[6], (output_size, linear_in), linear_in),
        "bl": uinit(ks[7], (output_size,), linear_in),
    }


def conv_base_forward(params, x):
    """Fused ConvBase forward. x: (..., L) -> (B, output_size)."""
    x = x.reshape(-1, x.shape[-1]).astype(jnp.float32)   # (B, L); conv1 C_in = 1
    B, L = x.shape
    C = params["w1"].shape[0]
    O = params["wl"].shape[0]

    L1 = _conv_out_len(L, 5, 2, 1)
    L2 = _conv_out_len(L1, 3, 2, 1)
    L3 = _conv_out_len(L2, 3, 2, 1)
    F1, F2, F3 = C * L1, C * L2, C * L3
    F1p, F2p, F3p = (_round_up(f, 128) for f in (F1, F2, F3))
    assert params["wl"].shape[1] == F3, (params["wl"].shape, F3)

    # Weight preprocessing (pure XLA, traced once under jit): unrolled conv
    # weights, pre-transposed linear weight, biases repeated per position.
    W1T, b1r, _ = _unrolled_conv(params["w1"], params["b1"], L, 2, 1, L, F1p)
    W2T, b2r, _ = _unrolled_conv(params["w2"], params["b2"], L1, 2, 1, F1p, F2p)
    W3T, b3r, _ = _unrolled_conv(params["w3"], params["b3"], L2, 2, 1, F2p, F3p)
    WlT = jnp.pad(params["wl"].T, ((0, F3p - F3), (0, 0)))          # (F3p, O)
    blr = params["bl"].reshape(1, O)

    # Batch tiling: one tile for small B; 128-row megacore-parallel tiles if it grows.
    TB = B if B <= 128 else 128
    grid = (pl.cdiv(B, TB),)

    flops = 2 * B * (L * F1p + F1p * F2p + F2p * F3p + F3p * O)
    bytes_accessed = 4 * (B * L + L * F1p + F1p + F1p * F2p + F2p
                          + F2p * F3p + F3p + F3p * O + O + B * O)

    return pl.pallas_call(
        _fused_forward_kernel,
        out_shape=jax.ShapeDtypeStruct((B, O), jnp.float32),
        grid=grid,
        in_specs=[
            pl.BlockSpec((TB, L), lambda i: (i, 0)),      # x
            pl.BlockSpec((L, F1p), lambda i: (0, 0)),     # W1^T (unrolled)
            pl.BlockSpec((1, F1p), lambda i: (0, 0)),     # b1
            pl.BlockSpec((F1p, F2p), lambda i: (0, 0)),   # W2^T (unrolled)
            pl.BlockSpec((1, F2p), lambda i: (0, 0)),     # b2
            pl.BlockSpec((F2p, F3p), lambda i: (0, 0)),   # W3^T (unrolled)
            pl.BlockSpec((1, F3p), lambda i: (0, 0)),     # b3
            pl.BlockSpec((F3p, O), lambda i: (0, 0)),     # Wl^T
            pl.BlockSpec((1, O), lambda i: (0, 0)),       # bl
        ],
        out_specs=pl.BlockSpec((TB, O), lambda i: (i, 0)),
        compiler_params=pltpu.CompilerParams(
            dimension_semantics=("parallel",)),
        cost_estimate=pl.CostEstimate(
            flops=flops, transcendentals=0, bytes_accessed=bytes_accessed),
    )(x, W1T, b1r, W2T, b2r, W3T, b3r, WlT, blr)


# --------------------------- pure-JAX reference ------------------------------

def _reference_forward(params, x):
    x = x.reshape(-1, 1, x.shape[-1]).astype(jnp.float32)

    def conv_relu(h, w, b, stride, padding):
        y = jax.lax.conv_general_dilated(
            h, w, (stride,), [(padding, padding)],
            dimension_numbers=("NCH", "OIH", "NCH"))
        return jnp.maximum(y + b[None, :, None], 0.0)

    h = conv_relu(x, params["w1"], params["b1"], 2, 1)
    h = conv_relu(h, params["w2"], params["b2"], 2, 1)
    h = conv_relu(h, params["w3"], params["b3"], 2, 1)
    h = h.reshape(h.shape[0], -1)
    return h @ params["wl"].T + params["bl"]


# ------------------------------------ main -----------------------------------

if __name__ == "__main__":
    key = jax.random.PRNGKey(0)
    k_param, k_x = jax.random.split(key)

    output_size, channels, linear_in = 10, 25, 125
    # seq length 40: conv sizes 40 -> 19 -> 10 -> 5, so 25 * 5 = 125 = linear_in
    batch, seq = 2, 40
    x = jax.random.normal(k_x, (batch, seq), dtype=jnp.float32)
    params = init_conv_base_params(k_param, output_size, channels, linear_in)

    fwd = jax.jit(conv_base_forward)
    out = jax.block_until_ready(fwd(params, x))
    assert out.shape == (batch, output_size), out.shape

    ref = jax.block_until_ready(_reference_forward(params, x))
    np.testing.assert_allclose(np.asarray(out), np.asarray(ref),
                               rtol=1e-4, atol=1e-4)
    print("KERNEL_OK")
</pallas_src>

<mosaic_0001>
module attributes {stable_mosaic.version = 11 : i64} {
  func.func @_fused_forward_kernel(%arg0: i32, %arg1: memref<2x40xf32, #tpu.memory_space<vmem>>, %arg2: memref<40x512xf32, #tpu.memory_space<vmem>>, %arg3: memref<1x512xf32, #tpu.memory_space<vmem>>, %arg4: memref<512x256xf32, #tpu.memory_space<vmem>>, %arg5: memref<1x256xf32, #tpu.memory_space<vmem>>, %arg6: memref<256x128xf32, #tpu.memory_space<vmem>>, %arg7: memref<1x128xf32, #tpu.memory_space<vmem>>, %arg8: memref<128x10xf32, #tpu.memory_space<vmem>>, %arg9: memref<1x10xf32, #tpu.memory_space<vmem>>, %arg10: memref<2x10xf32, #tpu.memory_space<vmem>>) attributes {dimension_semantics = [#tpu.dimension_semantics<parallel>], iteration_bounds = array<i64: 1>, scalar_prefetch = 0 : i64, scratch_operands = 0 : i64, tpu.core_type = #tpu.core_type<tc>, window_params = [{transform_indices = @transform_0, window_bounds = array<i64: 2, 40>}, {pipeline_mode = #tpu.pipeline_mode<synchronous>, transform_indices = @transform_1, window_bounds = array<i64: 40, 512>}, {pipeline_mode = #tpu.pipeline_mode<synchronous>, transform_indices = @transform_2, window_bounds = array<i64: 1, 512>}, {pipeline_mode = #tpu.pipeline_mode<synchronous>, transform_indices = @transform_3, window_bounds = array<i64: 512, 256>}, {pipeline_mode = #tpu.pipeline_mode<synchronous>, transform_indices = @transform_4, window_bounds = array<i64: 1, 256>}, {pipeline_mode = #tpu.pipeline_mode<synchronous>, transform_indices = @transform_5, window_bounds = array<i64: 256, 128>}, {pipeline_mode = #tpu.pipeline_mode<synchronous>, transform_indices = @transform_6, window_bounds = array<i64: 1, 128>}, {pipeline_mode = #tpu.pipeline_mode<synchronous>, transform_indices = @transform_7, window_bounds = array<i64: 128, 10>}, {pipeline_mode = #tpu.pipeline_mode<synchronous>, transform_indices = @transform_8, window_bounds = array<i64: 1, 10>}, {transform_indices = @transform_9, window_bounds = array<i64: 2, 10>}]} {
    %c0 = arith.constant 0 : index
    %c0_0 = arith.constant 0 : index
    %0 = vector.load %arg1[%c0, %c0_0] : memref<2x40xf32, #tpu.memory_space<vmem>>, vector<2x40xf32>
    %c0_1 = arith.constant 0 : index
    %c0_2 = arith.constant 0 : index
    %1 = vector.load %arg2[%c0_1, %c0_2] : memref<40x512xf32, #tpu.memory_space<vmem>>, vector<40x512xf32>
    %cst = arith.constant dense<0.000000e+00> : vector<2x512xf32>
    %2 = tpu.matmul %0, %1, %cst {dimension_numbers = #tpu.dot_dimension_numbers<[1], [0], [0], [1], [0, 0, 1, 1], [], []>} : vector<2x40xf32>, vector<40x512xf32>, vector<2x512xf32> -> vector<2x512xf32>
    %c0_3 = arith.constant 0 : index
    %c0_4 = arith.constant 0 : index
    %3 = vector.load %arg3[%c0_3, %c0_4] : memref<1x512xf32, #tpu.memory_space<vmem>>, vector<1x512xf32>
    %4 = vector.broadcast %3 : vector<1x512xf32> to vector<2x512xf32>
    %5 = arith.addf %2, %4 : vector<2x512xf32>
    %cst_5 = arith.constant 0.000000e+00 : f32
    %6 = vector.broadcast %cst_5 : f32 to vector<2x512xf32>
    %7 = arith.maximumf %5, %6 : vector<2x512xf32>
    %c0_6 = arith.constant 0 : index
    %c0_7 = arith.constant 0 : index
    %8 = vector.load %arg4[%c0_6, %c0_7] : memref<512x256xf32, #tpu.memory_space<vmem>>, vector<512x256xf32>
    %cst_8 = arith.constant dense<0.000000e+00> : vector<2x256xf32>
    %9 = tpu.matmul %7, %8, %cst_8 {dimension_numbers = #tpu.dot_dimension_numbers<[1], [0], [0], [1], [0, 0, 1, 1], [], []>} : vector<2x512xf32>, vector<512x256xf32>, vector<2x256xf32> -> vector<2x256xf32>
    %c0_9 = arith.constant 0 : index
    %c0_10 = arith.constant 0 : index
    %10 = vector.load %arg5[%c0_9, %c0_10] : memref<1x256xf32, #tpu.memory_space<vmem>>, vector<1x256xf32>
    %11 = vector.broadcast %10 : vector<1x256xf32> to vector<2x256xf32>
    %12 = arith.addf %9, %11 : vector<2x256xf32>
    %cst_11 = arith.constant 0.000000e+00 : f32
    %13 = vector.broadcast %cst_11 : f32 to vector<2x256xf32>
    %14 = arith.maximumf %12, %13 : vector<2x256xf32>
    %c0_12 = arith.constant 0 : index
    %c0_13 = arith.constant 0 : index
    %15 = vector.load %arg6[%c0_12, %c0_13] : memref<256x128xf32, #tpu.memory_space<vmem>>, vector<256x128xf32>
    %cst_14 = arith.constant dense<0.000000e+00> : vector<2x128xf32>
    %16 = tpu.matmul %14, %15, %cst_14 {dimension_numbers = #tpu.dot_dimension_numbers<[1], [0], [0], [1], [0, 0, 1, 1], [], []>} : vector<2x256xf32>, vector<256x128xf32>, vector<2x128xf32> -> vector<2x128xf32>
    %c0_15 = arith.constant 0 : index
    %c0_16 = arith.constant 0 : index
    %17 = vector.load %arg7[%c0_15, %c0_16] : memref<1x128xf32, #tpu.memory_space<vmem>>, vector<1x128xf32>
    %18 = vector.broadcast %17 : vector<1x128xf32> to vector<2x128xf32>
    %19 = arith.addf %16, %18 : vector<2x128xf32>
    %cst_17 = arith.constant 0.000000e+00 : f32
    %20 = vector.broadcast %cst_17 : f32 to vector<2x128xf32>
    %21 = arith.maximumf %19, %20 : vector<2x128xf32>
    %c0_18 = arith.constant 0 : index
    %c0_19 = arith.constant 0 : index
    %22 = vector.load %arg8[%c0_18, %c0_19] : memref<128x10xf32, #tpu.memory_space<vmem>>, vector<128x10xf32>
    %cst_20 = arith.constant dense<0.000000e+00> : vector<2x10xf32>
    %23 = tpu.matmul %21, %22, %cst_20 {dimension_numbers = #tpu.dot_dimension_numbers<[1], [0], [0], [1], [0, 0, 1, 1], [], []>} : vector<2x128xf32>, vector<128x10xf32>, vector<2x10xf32> -> vector<2x10xf32>
    %c0_21 = arith.constant 0 : index
    %c0_22 = arith.constant 0 : index
    %24 = vector.load %arg9[%c0_21, %c0_22] : memref<1x10xf32, #tpu.memory_space<vmem>>, vector<1x10xf32>
    %25 = vector.broadcast %24 : vector<1x10xf32> to vector<2x10xf32>
    %26 = arith.addf %23, %25 : vector<2x10xf32>
    %c0_23 = arith.constant 0 : index
    %c0_24 = arith.constant 0 : index
    %27 = vector.load %arg10[%c0_23, %c0_24] : memref<2x10xf32, #tpu.memory_space<vmem>>, vector<2x10xf32>
    tpu.vector_store %arg10[%c0_23, %c0_24], %26 {strides = array<i32>} : memref<2x10xf32, #tpu.memory_space<vmem>>, vector<2x10xf32>,
    return
  }
  func.func @transform_0(%arg0: i32) -> (i32, i32) {
    %c0_i32 = arith.constant 0 : i32
    %c0_i32_0 = arith.constant 0 : i32
    return %arg0, %c0_i32 : i32, i32
  }
  func.func @transform_1(%arg0: i32) -> (i32, i32) {
    %c0_i32 = arith.constant 0 : i32
    %c0_i32_0 = arith.constant 0 : i32
    %c0_i32_1 = arith.constant 0 : i32
    return %c0_i32, %c0_i32_0 : i32, i32
  }
  func.func @transform_2(%arg0: i32) -> (i32, i32) {
    %c0_i32 = arith.constant 0 : i32
    %c0_i32_0 = arith.constant 0 : i32
    %c0_i32_1 = arith.constant 0 : i32
    return %c0_i32, %c0_i32_0 : i32, i32
  }
  func.func @transform_3(%arg0: i32) -> (i32, i32) {
    %c0_i32 = arith.constant 0 : i32
    %c0_i32_0 = arith.constant 0 : i32
    %c0_i32_1 = arith.constant 0 : i32
    return %c0_i32, %c0_i32_0 : i32, i32
  }
  func.func @transform_4(%arg0: i32) -> (i32, i32) {
    %c0_i32 = arith.constant 0 : i32
    %c0_i32_0 = arith.constant 0 : i32
    %c0_i32_1 = arith.constant 0 : i32
    return %c0_i32, %c0_i32_0 : i32, i32
  }
  func.func @transform_5(%arg0: i32) -> (i32, i32) {
    %c0_i32 = arith.constant 0 : i32
    %c0_i32_0 = arith.constant 0 : i32
    %c0_i32_1 = arith.constant 0 : i32
    return %c0_i32, %c0_i32_0 : i32, i32
  }
  func.func @transform_6(%arg0: i32) -> (i32, i32) {
    %c0_i32 = arith.constant 0 : i32
    %c0_i32_0 = arith.constant 0 : i32
    %c0_i32_1 = arith.constant 0 : i32
    return %c0_i32, %c0_i32_0 : i32, i32
  }
  func.func @transform_7(%arg0: i32) -> (i32, i32) {
    %c0_i32 = arith.constant 0 : i32
    %c0_i32_0 = arith.constant 0 : i32
    %c0_i32_1 = arith.constant 0 : i32
    return %c0_i32, %c0_i32_0 : i32, i32
  }
  func.func @transform_8(%arg0: i32) -> (i32, i32) {
    %c0_i32 = arith.constant 0 : i32
    %c0_i32_0 = arith.constant 0 : i32
    %c0_i32_1 = arith.constant 0 : i32
    return %c0_i32, %c0_i32_0 : i32, i32
  }
  func.func @transform_9(%arg0: i32) -> (i32, i32) {
    %c0_i32 = arith.constant 0 : i32
    %c0_i32_0 = arith.constant 0 : i32
    return %arg0, %c0_i32 : i32, i32
  }
}

</mosaic_0001>

<bundles_post_ra>
// kernel: conv_base_forward.1
= control target key start
LH: loop header
LB: loop body
LE: loop exit
PB: predicated region body
PF: predicated region fallthrough
CT: control target
= control target key end

     0   :  { %v1052_v7 = vmov 0.0   ;;  %vm76_vm0 = vcmask 326656   ;;  %s1749_s0 = inlined_call_operand.vmem [shape: f32[2,40], index: 0, kind: input, shape index: {}]   ;;  %s1750_s1 = inlined_call_operand.vmem [shape: f32[40,512], index: 1, kind: input, shape index: {}]   ;;  %s1751_s2 = inlined_call_operand.vmem [shape: f32[1,512], index: 2, kind: input, shape index: {}]   ;;  %s1752_s3 = inlined_call_operand.vmem [shape: f32[512,256], index: 3, kind: input, shape index: {}]   ;;  %s1753_s4 = inlined_call_operand.vmem [shape: f32[1,256], index: 4, kind: input, shape index: {}]   ;;  %s1754_s5 = inlined_call_operand.vmem [shape: f32[256,128], index: 5, kind: input, shape index: {}]   ;;  %s1755_s6 = inlined_call_operand.vmem [shape: f32[1,128], index: 6, kind: input, shape index: {}]   ;;  %s1756_s7 = inlined_call_operand.vmem [shape: f32[128,10], index: 7, kind: input, shape index: {}]   ;;  %s1757_s8 = inlined_call_operand.vmem [shape: f32[1,10], index: 8, kind: input, shape index: {}]   ;;  %s1758_s9 = inlined_call_operand.hbm [shape: f32[2,10], index: 9, kind: output, shape index: {}]  }
   0x1   :  { %v35_v0 = vld [vmem:[%s1750_s1 + $0x8] sm:$0xff]  ;;  %v34_v2 = vld [vmem:[%s1750_s1] sm:$0xff]  ;;  %144 = vmatprep.mubr.f32.mxu1 %v1052_v7  ;;  %v37_v14 = vld [vmem:[%s1750_s1 + $0x18] sm:$0xff] }
   0x2   :  { %v39_v1 = vld [vmem:[%s1750_s1 + $0x28] sm:$0xff]  ;;  %v38_v4 = vld [vmem:[%s1750_s1 + $0x20] sm:$0xff]  ;;  %v41_v15 = vld [vmem:[%s1750_s1 + $0x38] sm:$0xff] }
   0x3   :  { %v820_v3 = vpack.c.bf16 %v39_v1, %v35_v0  ;;  %v43_v5 = vld [vmem:[%s1750_s1 + $0x48] sm:$0xff]  ;;  %v822_v8 = vpack.c.bf16 %v38_v4, %v34_v2  ;;  %v42_v10 = vld [vmem:[%s1750_s1 + $0x40] sm:$0xff]  ;;  %v36_v16 = vld [vmem:[%s1750_s1 + $0x10] sm:$0xff]  ;;  %v828_v28 = vpack.c.bf16 %v41_v15, %v37_v14 }
   0x4   :  { %v47_v6 = vld [vmem:[%s1750_s1 + $0x68] sm:$0xff]  ;;  %v46_v11 = vld [vmem:[%s1750_s1 + $0x60] sm:$0xff]  ;;  %v40_v17 = vld [vmem:[%s1750_s1 + $0x30] sm:$0xff] }
   0x5   :  { %v824_v9 = vpack.c.bf16 %v47_v6, %v43_v5  ;;  %821 = vmatprep.subr.bf16.mxu1 %v820_v3  ;;  %v826_v12 = vpack.c.bf16 %v46_v11, %v42_v10  ;;  %v51_v13 = vld [vmem:[%s1750_s1 + $0x88] sm:$0xff]  ;;  %v45_v18 = vld [vmem:[%s1750_s1 + $0x58] sm:$0xff]  ;;  %v50_v20 = vld [vmem:[%s1750_s1 + $0x80] sm:$0xff]  ;;  %v830_v35 = vpack.c.bf16 %v40_v17, %v36_v16 }
   0x6   :  { %823 = vmatpush1.bf16.msra.mxu1 %v822_v8  ;;  %v49_v19 = vld [vmem:[%s1750_s1 + $0x78] sm:$0xff]  ;;  %v227_v21 = vld [vmem:[%s1752_s3 + $0x8] sm:$0xff]  ;;  %v226_v23 = vld [vmem:[%s1752_s3] sm:$0xff] }
   0x7   :  { %825 = vmatprep.subr.bf16.mxu1 %v824_v9  ;;  %v229_v22 = vld [vmem:[%s1752_s3 + $0x18] sm:$0xff]  ;;  %v228_v25 = vld [vmem:[%s1752_s3 + $0x10] sm:$0xff]  ;;  %v231_v26 = vld [vmem:[%s1752_s3 + $0x28] sm:$0xff]  ;;  %v832_v37 = vpack.c.bf16 %v49_v19, %v45_v18 }
   0x8   :  { %v836_v24 = vpack.c.bf16 %v229_v22, %v227_v21  ;;  %v233_v27 = vld [vmem:[%s1752_s3 + $0x38] sm:$0xff]  ;;  %v838_v29 = vpack.c.bf16 %v228_v25, %v226_v23  ;;  %v230_v31 = vld [vmem:[%s1752_s3 + $0x20] sm:$0xff]  ;;  %v232_v32 = vld [vmem:[%s1752_s3 + $0x30] sm:$0xff] }
   0x9   :  { %v840_v30 = vpack.c.bf16 %v233_v27, %v231_v26  ;;  %v235_v33 = vld [vmem:[%s1752_s3 + $0x48] sm:$0xff]  ;;  %v33_v34 = vld [vmem:[%s1749_s0] sm:$0x3]  ;;  %v237_v36 = vld [vmem:[%s1752_s3 + $0x58] sm:$0xff]  ;;  %v842_v40 = vpack.c.bf16 %v232_v32, %v230_v31 }
   0xa   :  { %827 = vmatpush1.bf16.msra.mxu1 %v826_v12  ;;  %837 = vmatprep.subr.bf16.mxu0 %v836_v24  ;;  %v44_v38 = vld [vmem:[%s1750_s1 + $0x50] sm:$0xff]  ;;  %v844_v41 = vpack.c.bf16 %v237_v36, %v235_v33  ;;  %v234_v42 = vld [vmem:[%s1752_s3 + $0x40] sm:$0xff]  ;;  %v239_v44 = vld [vmem:[%s1752_s3 + $0x68] sm:$0xff] }
   0xb   :  { %88 = vmatprep.subr.mxu1 %v51_v13  ;;  %v48_v39 = vld [vmem:[%s1750_s1 + $0x70] sm:$0xff]  ;;  %839 = vmatpush1.bf16.msra.mxu0 %v838_v29  ;;  %v241_v45 = vld [vmem:[%s1752_s3 + $0x78] sm:$0xff]  ;;  %v238_v50 = vld [vmem:[%s1752_s3 + $0x60] sm:$0xff] }
   0xc   :  { %841 = vmatprep.subr.bf16.mxu0 %v840_v30  ;;  %v236_v43 = vld [vmem:[%s1752_s3 + $0x50] sm:$0xff]  ;;  %v834_v46 = vpack.c.bf16 %v48_v39, %v44_v38  ;;  %v53_v48 = vld [vmem:[%s1750_s1 + $0x98] sm:$0xff]  ;;  %v848_v49 = vpack.c.bf16 %v241_v45, %v239_v44  ;;  %v243_v52 = vld [vmem:[%s1752_s3 + $0x88] sm:$0xff] }
   0xd   :  { %v846_v47 = vpack.c.bf16 %v236_v43, %v234_v42  ;;  %v240_v51 = vld [vmem:[%s1752_s3 + $0x70] sm:$0xff]  ;;  %v245_v53 = vld [vmem:[%s1752_s3 + $0x98] sm:$0xff]  ;;  %v242_v57 = vld [vmem:[%s1752_s3 + $0x80] sm:$0xff] }
   0xe   :  { %89 = vmatpush1.msra.mxu1 %v50_v20  ;;  %v52_v54 = vld [vmem:[%s1750_s1 + $0x90] sm:$0xff]  ;;  %v850_v55 = vpack.c.bf16 %v240_v51, %v238_v50  ;;  %v852_v56 = vpack.c.bf16 %v245_v53, %v243_v52  ;;  %v247_v59 = vld [vmem:[%s1752_s3 + $0xa8] sm:$0xff]  ;;  %v249_v60 = vld [vmem:[%s1752_s3 + $0xb8] sm:$0xff] }
   0xf   :  { %729 = vmatmul.mubr.msk.f32.vlgmr.msra.gmra.mrb[0].mxu1 %vm76_vm0, %v33_v34  ;;  %829 = vmatprep.subr.bf16.mxu1 %v828_v28  ;;  %v244_v58 = vld [vmem:[%s1752_s3 + $0x90] sm:$0xff]  ;;  %v856_v62 = vpack.c.bf16 %v249_v60, %v247_v59  ;;  %v246_v63 = vld [vmem:[%s1752_s3 + $0xa0] sm:$0xff]  ;;  %v251_v1 = vld [vmem:[%s1752_s3 + $0xc8] sm:$0xff] }
  0x10   :  { %831 = vmatpush1.bf16.msra.mxu1 %v830_v35  ;;  %215 = vmatprep.mubr.f32.mxu1 %v1052_v7  ;;  %v854_v61 = vpack.c.bf16 %v244_v58, %v242_v57  ;;  %v248_v0 = vld [vmem:[%s1752_s3 + $0xb0] sm:$0xff]  ;;  %v253_v2 = vld [vmem:[%s1752_s3 + $0xd8] sm:$0xff] }
  0x11   :  { %833 = vmatprep.subr.bf16.mxu1 %v832_v37  ;;  %843 = vmatpush1.bf16.msra.mxu0 %v842_v40  ;;  %v858_v3 = vpack.c.bf16 %v248_v0, %v246_v63 }
  0x12   :  { %845 = vmatprep.subr.bf16.mxu0 %v844_v41 }
  0x14   :  { %835 = vmatpush1.bf16.msra.mxu1 %v834_v46 }
  0x15   :  { %159 = vmatprep.subr.mxu1 %v53_v48  ;;  %847 = vmatpush1.bf16.msra.mxu0 %v846_v47 }
  0x16   :  { %849 = vmatprep.subr.bf16.mxu0 %v848_v49 }
  0x18   :  { %160 = vmatpush1.msra.mxu1 %v52_v54 }
  0x19   :  { %730 = vmatmul.mubr.msk.f32.vlgmr.msra.gmra.mrb[2].mxu1 %vm76_vm0, %v33_v34  ;;  %851 = vmatpush1.bf16.msra.mxu0 %v850_v55 }
  0x1a   :  { %853 = vmatprep.subr.bf16.mxu0 %v852_v56 }
  0x1d   :  { %855 = vmatpush1.bf16.msra.mxu0 %v854_v61 }
  0x1e   :  { %14 = vsyncpa [#allocation3], 0  ;;  %857 = vmatprep.subr.bf16.mxu0 %v856_v62  ;;  %v860_v4 = vpack.c.bf16 %v253_v2, %v251_v1  ;;  %v250_v5 = vld [vmem:[%s1752_s3 + $0xc0] sm:$0xff]  ;;  %v252_v6 = vld [vmem:[%s1752_s3 + $0xd0] sm:$0xff]  ;;  %vm1054_vm1 = vmmov 0   ;;  %vm713_vm2 = vcmask 74752  }
  0x1f   :  { %v255_v8 = vld [vmem:[%s1752_s3 + $0xe8] sm:$0xff]  ;;  %v257_v9 = vld [vmem:[%s1752_s3 + $0xf8] sm:$0xff]  ;;  %v862_v10 = vpack.c.bf16 %v252_v6, %v250_v5  ;;  %v254_v12 = vld [vmem:[%s1752_s3 + $0xe0] sm:$0xff] }
  0x20   :  { %v864_v11 = vpack.c.bf16 %v257_v9, %v255_v8  ;;  %v256_v13 = vld [vmem:[%s1752_s3 + $0xf0] sm:$0xff]  ;;  %v259_v14 = vld [vmem:[%s1752_s3 + $0x108] sm:$0xff]  ;;  %v261_v15 = vld [vmem:[%s1752_s3 + $0x118] sm:$0xff] }
  0x21   :  { %859 = vmatpush1.bf16.msra.mxu0 %v858_v3  ;;  %v866_v16 = vpack.c.bf16 %v256_v13, %v254_v12  ;;  %v868_v17 = vpack.c.bf16 %v261_v15, %v259_v14  ;;  %v258_v18 = vld [vmem:[%s1752_s3 + $0x100] sm:$0xff]  ;;  %v260_v19 = vld [vmem:[%s1752_s3 + $0x110] sm:$0xff]  ;;  %v263_v20 = vld [vmem:[%s1752_s3 + $0x128] sm:$0xff] }
  0x22   :  { %861 = vmatprep.subr.bf16.mxu0 %v860_v4  ;;  %v265_v21 = vld [vmem:[%s1752_s3 + $0x138] sm:$0xff]  ;;  %v870_v22 = vpack.c.bf16 %v260_v19, %v258_v18  ;;  %v262_v24 = vld [vmem:[%s1752_s3 + $0x120] sm:$0xff]  ;;  %v264_v25 = vld [vmem:[%s1752_s3 + $0x130] sm:$0xff] }
  0x23   :  { %v872_v23 = vpack.c.bf16 %v265_v21, %v263_v20  ;;  %v267_v26 = vld [vmem:[%s1752_s3 + $0x148] sm:$0xff]  ;;  %v269_v27 = vld [vmem:[%s1752_s3 + $0x158] sm:$0xff]  ;;  %v874_v28 = vpack.c.bf16 %v264_v25, %v262_v24  ;;  %v266_v30 = vld [vmem:[%s1752_s3 + $0x140] sm:$0xff] }
  0x24   :  { %v876_v29 = vpack.c.bf16 %v269_v27, %v267_v26  ;;  %v268_v31 = vld [vmem:[%s1752_s3 + $0x150] sm:$0xff]  ;;  %v271_v32 = vld [vmem:[%s1752_s3 + $0x168] sm:$0xff]  ;;  %v273_v33 = vld [vmem:[%s1752_s3 + $0x178] sm:$0xff] }
  0x25   :  { %863 = vmatpush1.bf16.msra.mxu0 %v862_v10  ;;  %v878_v34 = vpack.c.bf16 %v268_v31, %v266_v30  ;;  %v880_v35 = vpack.c.bf16 %v273_v33, %v271_v32  ;;  %v270_v36 = vld [vmem:[%s1752_s3 + $0x160] sm:$0xff]  ;;  %v272_v37 = vld [vmem:[%s1752_s3 + $0x170] sm:$0xff]  ;;  %v275_v38 = vld [vmem:[%s1752_s3 + $0x188] sm:$0xff] }
  0x26   :  { %865 = vmatprep.subr.bf16.mxu0 %v864_v11  ;;  %v277_v39 = vld [vmem:[%s1752_s3 + $0x198] sm:$0xff]  ;;  %v882_v40 = vpack.c.bf16 %v272_v37, %v270_v36  ;;  %v274_v42 = vld [vmem:[%s1752_s3 + $0x180] sm:$0xff]  ;;  %v276_v43 = vld [vmem:[%s1752_s3 + $0x190] sm:$0xff] }
  0x27   :  { %v884_v41 = vpack.c.bf16 %v277_v39, %v275_v38  ;;  %v279_v44 = vld [vmem:[%s1752_s3 + $0x1a8] sm:$0xff]  ;;  %v281_v45 = vld [vmem:[%s1752_s3 + $0x1b8] sm:$0xff]  ;;  %v886_v46 = vpack.c.bf16 %v276_v43, %v274_v42  ;;  %v278_v48 = vld [vmem:[%s1752_s3 + $0x1a0] sm:$0xff]  ;;  %v56_v42 = vlaneseq }
  0x28   :  { %v888_v47 = vpack.c.bf16 %v281_v45, %v279_v44  ;;  %v280_v49 = vld [vmem:[%s1752_s3 + $0x1b0] sm:$0xff]  ;;  %v283_v50 = vld [vmem:[%s1752_s3 + $0x1c8] sm:$0xff]  ;;  %v285_v51 = vld [vmem:[%s1752_s3 + $0x1d8] sm:$0xff] }
  0x29   :  { %867 = vmatpush1.bf16.msra.mxu0 %v866_v16  ;;  %v890_v52 = vpack.c.bf16 %v280_v49, %v278_v48  ;;  %v892_v53 = vpack.c.bf16 %v285_v51, %v283_v50  ;;  %v282_v54 = vld [vmem:[%s1752_s3 + $0x1c0] sm:$0xff]  ;;  %v284_v55 = vld [vmem:[%s1752_s3 + $0x1d0] sm:$0xff]  ;;  %v287_v57 = vld [vmem:[%s1752_s3 + $0x1e8] sm:$0xff]  ;;  %v1449_v43 = vshrl.u32 %v56_v42, 7 }
  0x2a   :  { %869 = vmatprep.subr.bf16.mxu0 %v868_v17  ;;  %v894_v56 = vpack.c.bf16 %v284_v55, %v282_v54  ;;  %v289_v58 = vld [vmem:[%s1752_s3 + $0x1f8] sm:$0xff]  ;;  %v286_v60 = vld [vmem:[%s1752_s3 + $0x1e0] sm:$0xff]  ;;  %v288_v61 = vld [vmem:[%s1752_s3 + $0x1f0] sm:$0xff] }
  0x2b   :  { %v896_v59 = vpack.c.bf16 %v289_v58, %v287_v57  ;;  %v898_v62 = vpack.c.bf16 %v288_v61, %v286_v60  ;;  %v291_v63 = vld [vmem:[%s1752_s3 + $0x208] sm:$0xff]  ;;  %v293_v0 = vld [vmem:[%s1752_s3 + $0x218] sm:$0xff]  ;;  %v526_v2 = vld [vmem:[%s1754_s5 + $0x80] sm:$0xff]  ;;  %v58_v44 = vsub.s32 0, %v1449_v43 }
  0x2c   :  { %v900_v1 = vpack.c.bf16 %v293_v0, %v291_v63  ;;  %v527_v3 = vld [vmem:[%s1754_s5 + $0x88] sm:$0xff]  ;;  %v510_v4 = vld [vmem:[%s1754_s5] sm:$0xff]  ;;  %v528_v8 = vld [vmem:[%s1754_s5 + $0x90] sm:$0xff] }
  0x2d   :  { %871 = vmatpush1.bf16.msra.mxu0 %v870_v22  ;;  %v964_v5 = vpack.c.bf16 %v527_v3, %v526_v2  ;;  %v511_v6 = vld [vmem:[%s1754_s5 + $0x8] sm:$0xff]  ;;  %v529_v9 = vld [vmem:[%s1754_s5 + $0x98] sm:$0xff]  ;;  %v512_v12 = vld [vmem:[%s1754_s5 + $0x10] sm:$0xff] }
  0x2e   :  { %873 = vmatprep.subr.bf16.mxu0 %v872_v23  ;;  %v966_v10 = vpack.c.bf16 %v511_v6, %v510_v4  ;;  %v968_v11 = vpack.c.bf16 %v529_v9, %v528_v8  ;;  %v513_v13 = vld [vmem:[%s1754_s5 + $0x18] sm:$0xff]  ;;  %v530_v14 = vld [vmem:[%s1754_s5 + $0xa0] sm:$0xff]  ;;  %v531_v15 = vld [vmem:[%s1754_s5 + $0xa8] sm:$0xff] }
  0x2f   :  { %965 = vmatprep.subr.bf16.mxu1 %v964_v5  ;;  %v970_v16 = vpack.c.bf16 %v513_v13, %v512_v12  ;;  %v972_v17 = vpack.c.bf16 %v531_v15, %v530_v14  ;;  %v514_v18 = vld [vmem:[%s1754_s5 + $0x20] sm:$0xff]  ;;  %v515_v19 = vld [vmem:[%s1754_s5 + $0x28] sm:$0xff]  ;;  %v532_v20 = vld [vmem:[%s1754_s5 + $0xb0] sm:$0xff] }
  0x30   :  { %967 = vmatpush3.bf16.msra.mxu1 %v966_v10  ;;  %v533_v21 = vld [vmem:[%s1754_s5 + $0xb8] sm:$0xff]  ;;  %v974_v22 = vpack.c.bf16 %v515_v19, %v514_v18  ;;  %v516_v24 = vld [vmem:[%s1754_s5 + $0x30] sm:$0xff]  ;;  %v534_v26 = vld [vmem:[%s1754_s5 + $0xc0] sm:$0xff] }
  0x31   :  { %875 = vmatpush1.bf16.msra.mxu0 %v874_v28  ;;  %969 = vmatprep.subr.bf16.mxu1 %v968_v11  ;;  %v976_v23 = vpack.c.bf16 %v533_v21, %v532_v20  ;;  %v517_v25 = vld [vmem:[%s1754_s5 + $0x38] sm:$0xff]  ;;  %v535_v27 = vld [vmem:[%s1754_s5 + $0xc8] sm:$0xff]  ;;  %v518_v30 = vld [vmem:[%s1754_s5 + $0x40] sm:$0xff] }
  0x32   :  { %877 = vmatprep.subr.bf16.mxu0 %v876_v29  ;;  %v978_v28 = vpack.c.bf16 %v517_v25, %v516_v24  ;;  %v980_v29 = vpack.c.bf16 %v535_v27, %v534_v26  ;;  %v519_v31 = vld [vmem:[%s1754_s5 + $0x48] sm:$0xff]  ;;  %v536_v32 = vld [vmem:[%s1754_s5 + $0xd0] sm:$0xff]  ;;  %v537_v33 = vld [vmem:[%s1754_s5 + $0xd8] sm:$0xff] }
  0x33   :  { %v520_v36 = vld [vmem:[%s1754_s5 + $0x50] sm:$0xff]  ;;  %v521_v37 = vld [vmem:[%s1754_s5 + $0x58] sm:$0xff]  ;;  %v538_v38 = vld [vmem:[%s1754_s5 + $0xe0] sm:$0xff] }
  0x34   :  { %971 = vmatpush3.bf16.msra.mxu1 %v970_v16  ;;  %v539_v39 = vld [vmem:[%s1754_s5 + $0xe8] sm:$0xff]  ;;  %v1455_v45 = vld [vmem:[%s1751_s2] sm:$0xf]  ;;  %v296_v63 = vld [vmem:[%s1752_s3 + $0x230] sm:$0xff] }
  0x35   :  { %879 = vmatpush1.bf16.msra.mxu0 %v878_v34  ;;  %973 = vmatprep.subr.bf16.mxu1 %v972_v17  ;;  %v982_v34 = vpack.c.bf16 %v519_v31, %v518_v30  ;;  %v295_v55 = vld [vmem:[%s1752_s3 + $0x228] sm:$0xff]  ;;  %v298_v5 = vld [vmem:[%s1752_s3 + $0x240] sm:$0xff]  ;;  %v300_v6 = vld [vmem:[%s1752_s3 + $0x250] sm:$0xff] }
  0x36   :  { %881 = vmatprep.subr.bf16.mxu0 %v880_v35  ;;  %v984_v35 = vpack.c.bf16 %v537_v33, %v536_v32  ;;  %v299_v0 = vld [vmem:[%s1752_s3 + $0x248] sm:$0xff]  ;;  %v305_v9 = vld [vmem:[%s1752_s3 + $0x278] sm:$0xff]  ;;  %v910_v12 = vpack.c.bf16 %v300_v6, %v298_v5  ;;  %v302_v15 = vld [vmem:[%s1752_s3 + $0x260] sm:$0xff] }
  0x37   :  { %v303_v8 = vld [vmem:[%s1752_s3 + $0x268] sm:$0xff]  ;;  %v304_v16 = vld [vmem:[%s1752_s3 + $0x270] sm:$0xff]  ;;  %v309_v18 = vld [vmem:[%s1752_s3 + $0x298] sm:$0xff] }
  0x38   :  { %975 = vmatpush3.bf16.msra.mxu1 %v974_v22  ;;  %v912_v14 = vpack.c.bf16 %v305_v9, %v303_v8  ;;  %v307_v17 = vld [vmem:[%s1752_s3 + $0x288] sm:$0xff]  ;;  %v914_v20 = vpack.c.bf16 %v304_v16, %v302_v15  ;;  %v306_v22 = vld [vmem:[%s1752_s3 + $0x280] sm:$0xff]  ;;  %v313_v25 = vld [vmem:[%s1752_s3 + $0x2b8] sm:$0xff] }
  0x39   :  { %883 = vmatpush1.bf16.msra.mxu0 %v882_v40  ;;  %977 = vmatprep.subr.bf16.mxu1 %v976_v23  ;;  %v986_v40 = vpack.c.bf16 %v521_v37, %v520_v36  ;;  %v916_v21 = vpack.c.bf16 %v309_v18, %v307_v17  ;;  %v308_v23 = vld [vmem:[%s1752_s3 + $0x290] sm:$0xff]  ;;  %v311_v24 = vld [vmem:[%s1752_s3 + $0x2a8] sm:$0xff]  ;;  %v317_v31 = vld [vmem:[%s1752_s3 + $0x2d8] sm:$0xff] }
  0x3a   :  { %885 = vmatprep.subr.bf16.mxu0 %v884_v41  ;;  %v988_v41 = vpack.c.bf16 %v539_v39, %v538_v38  ;;  %v918_v26 = vpack.c.bf16 %v308_v23, %v306_v22  ;;  %v920_v27 = vpack.c.bf16 %v313_v25, %v311_v24  ;;  %v315_v30 = vld [vmem:[%s1752_s3 + $0x2c8] sm:$0xff]  ;;  %v321_v37 = vld [vmem:[%s1752_s3 + $0x2f8] sm:$0xff]  ;;  %v336_v5 = vld [vmem:[%s1752_s3 + $0x370] sm:$0xff]  ;;  %v66_v23 = vsub.s32 2, %v1449_v43 }
  0x3b   :  { %v924_v33 = vpack.c.bf16 %v317_v31, %v315_v30  ;;  %v319_v36 = vld [vmem:[%s1752_s3 + $0x2e8] sm:$0xff]  ;;  %v341_v8 = vld [vmem:[%s1752_s3 + $0x398] sm:$0xff]  ;;  %v342_v18 = vld [vmem:[%s1752_s3 + $0x3a0] sm:$0xff] }
  0x3c   :  { %979 = vmatpush3.bf16.msra.mxu1 %v978_v28  ;;  %v310_v28 = vld [vmem:[%s1752_s3 + $0x2a0] sm:$0xff]  ;;  %v928_v39 = vpack.c.bf16 %v321_v37, %v319_v36  ;;  %v323_v42 = vld [vmem:[%s1752_s3 + $0x308] sm:$0xff]  ;;  %v345_v15 = vld [vmem:[%s1752_s3 + $0x3b8] sm:$0xff]  ;;  %v67_v30 = vrot.slane %v1455_v45, %v66_v23 }
  0x3d   :  { %887 = vmatpush1.bf16.msra.mxu0 %v886_v46  ;;  %981 = vmatprep.subr.bf16.mxu1 %v980_v29  ;;  %v62_v46 = vsub.s32 1, %v1449_v43  ;;  %v312_v29 = vld [vmem:[%s1752_s3 + $0x2b0] sm:$0xff]  ;;  %v339_v6 = vld [vmem:[%s1752_s3 + $0x388] sm:$0xff]  ;;  %v346_v25 = vld [vmem:[%s1752_s3 + $0x3c0] sm:$0xff] }
  0x3e   :  { %889 = vmatprep.subr.bf16.mxu0 %v888_v47  ;;  %v59_v47 = vrot.slane %v1455_v45, %v58_v44  ;;  %v922_v32 = vpack.c.bf16 %v312_v29, %v310_v28  ;;  %v353_v28 = vld [vmem:[%s1752_s3 + $0x3f8] sm:$0xff]  ;;  %v523_v37 = vld [vmem:[%s1754_s5 + $0x68] sm:$0xff]  ;;  %v732_v23 = vld [vmem:[%s1757_s8] ss:$0 sm:$0xff] }
  0x3f   :  { %v63_v48 = vrot.slane %v1455_v45, %v62_v46 }
  0x40   :  { %983 = vmatpush3.bf16.msra.mxu1 %v982_v34  ;;  %v314_v34 = vld [vmem:[%s1752_s3 + $0x2c0] sm:$0xff] }
  0x41   :  { %891 = vmatpush1.bf16.msra.mxu0 %v890_v52  ;;  %985 = vmatprep.subr.bf16.mxu1 %v984_v35  ;;  %v290_v52 = vld [vmem:[%s1752_s3 + $0x200] sm:$0xff]  ;;  %v316_v35 = vld [vmem:[%s1752_s3 + $0x2d0] sm:$0xff] }
  0x42   :  { %893 = vmatprep.subr.bf16.mxu0 %v892_v53  ;;  %v292_v53 = vld [vmem:[%s1752_s3 + $0x210] sm:$0xff]  ;;  %v926_v38 = vpack.c.bf16 %v316_v35, %v314_v34 }
  0x43   :  { %v902_v58 = vpack.c.bf16 %v292_v53, %v290_v52  ;;  %v327_v52 = vld [vmem:[%s1752_s3 + $0x328] sm:$0xff]  ;;  %v329_v53 = vld [vmem:[%s1752_s3 + $0x338] sm:$0xff] }
  0x44   :  { %987 = vmatpush3.bf16.msra.mxu1 %v986_v40  ;;  %v318_v40 = vld [vmem:[%s1752_s3 + $0x2e0] sm:$0xff] }
  0x45   :  { %895 = vmatpush1.bf16.msra.mxu0 %v894_v56  ;;  %989 = vmatprep.subr.bf16.mxu1 %v988_v41  ;;  %v297_v56 = vld [vmem:[%s1752_s3 + $0x238] sm:$0xff]  ;;  %v320_v41 = vld [vmem:[%s1752_s3 + $0x2f0] sm:$0xff] }
  0x46   :  { %897 = vmatprep.subr.bf16.mxu0 %v896_v59  ;;  %v70_v59 = vsub.s32 3, %v1449_v43  ;;  %v904_v61 = vpack.c.bf16 %v297_v56, %v295_v55  ;;  %v936_v55 = vpack.c.bf16 %v329_v53, %v327_v52  ;;  %v326_v56 = vld [vmem:[%s1752_s3 + $0x320] sm:$0xff]  ;;  %v622_v43 = vld [vmem:[%s1756_s7 + $0x10] sm:$0xff] }
  0x48   :  { %v71_v3 = vrot.slane %v1455_v45, %v70_v59  ;;  %v333_v59 = vld [vmem:[%s1752_s3 + $0x358] sm:$0xff]  ;;  %v522_v45 = vld [vmem:[%s1754_s5 + $0x60] sm:$0xff] }
  0x49   :  { %899 = vmatpush1.bf16.msra.mxu0 %v898_v62  ;;  %v294_v62 = vld [vmem:[%s1752_s3 + $0x220] sm:$0xff] }
  0x4a   :  { %901 = vmatprep.subr.bf16.mxu0 %v900_v1  ;;  %v301_v1 = vld [vmem:[%s1752_s3 + $0x258] sm:$0xff]  ;;  %v906_v2 = vpack.c.bf16 %v296_v63, %v294_v62  ;;  %v330_v62 = vld [vmem:[%s1752_s3 + $0x340] sm:$0xff]  ;;  %v332_v63 = vld [vmem:[%s1752_s3 + $0x350] sm:$0xff] }
  0x4b   :  { %v908_v4 = vpack.c.bf16 %v301_v1, %v299_v0  ;;  %v335_v0 = vld [vmem:[%s1752_s3 + $0x368] sm:$0xff]  ;;  %v337_v1 = vld [vmem:[%s1752_s3 + $0x378] sm:$0xff] }
  0xe2   :  { %v146_v49 = vpop.f32.mrb[0].mxu1 }
  0xe3   :  { %v147_v50 = vadd.f32 %v146_v49, %v59_v47  ;;  %v148_v51 = vpop.f32.mrb[1].mxu1  ;;  %v325_v47 = vld [vmem:[%s1752_s3 + $0x318] sm:$0xff] }
  0xe4   :  { %v149_v54 = vadd.f32 %v148_v51, %v63_v48  ;;  %v930_v48 = vpack.c.bf16 %v320_v41, %v318_v40  ;;  %v932_v49 = vpack.c.bf16 %v325_v47, %v323_v42  ;;  %v324_v51 = vld [vmem:[%s1752_s3 + $0x310] sm:$0xff]  ;;  %v525_v42 = vld [vmem:[%s1754_s5 + $0x78] sm:$0xff] }
  0xe5   :  { %v222_v60 = vmax.f32 %v147_v50, 0.0  ;;  %v322_v50 = vld [vmem:[%s1752_s3 + $0x300] sm:$0xff]  ;;  %v524_v41 = vld [vmem:[%s1754_s5 + $0x70] sm:$0xff] }
  0xe6   :  { %v223_v57 = vmax.f32 %v149_v54, 0.0  ;;  %v934_v54 = vpack.c.bf16 %v324_v51, %v322_v50  ;;  %v994_v47 = vpack.c.bf16 %v525_v42, %v524_v41 }
  0xe8   :  { %430 = vmatprep.mubr.f32.mxu0 %v223_v57  ;;  %v328_v57 = vld [vmem:[%s1752_s3 + $0x330] sm:$0xff] }
  0xe9   :  { %431 = vmatmul.mubr.f32.vlgmr.msra.gmra.mrb[0].mxu0 %v222_v60  ;;  %v938_v60 = vpack.c.bf16 %v328_v57, %v326_v56  ;;  %v621_v56 = vld [vmem:[%s1756_s7 + $0x8] sm:$0xff] }
  0xea   :  { %903 = vmatpush1.bf16.msra.mxu0 %v902_v58  ;;  %v331_v58 = vld [vmem:[%s1752_s3 + $0x348] sm:$0xff] }
  0xeb   :  { %905 = vmatprep.subr.bf16.mxu0 %v904_v61  ;;  %v940_v61 = vpack.c.bf16 %v333_v59, %v331_v58 }
  0xec   :  { %v1502_v10 = vpop.f32.mrb[2].mxu1 }
  0xed   :  { %v219_v11 = vpop.f32.mrb[3].mxu1  ;;  %v218_v35 = vadd.f32 %v1502_v10, %v67_v30  ;;  %v541_v10 = vld [vmem:[%s1754_s5 + $0xf8] sm:$0xff] }
  0xee   :  { %907 = vmatpush1.bf16.msra.mxu0 %v906_v2  ;;  %v220_v13 = vadd.f32 %v219_v11, %v71_v3  ;;  %v942_v2 = vpack.c.bf16 %v332_v63, %v330_v62  ;;  %v944_v3 = vpack.c.bf16 %v337_v1, %v335_v0  ;;  %v948_v11 = vpack.c.bf16 %v341_v8, %v339_v6  ;;  %v625_v62 = vld [vmem:[%s1756_s7 + $0x28] sm:$0xff]  ;;  %v626_v0 = vld [vmem:[%s1756_s7 + $0x30] sm:$0xff]  ;;  %v627_v1 = vld [vmem:[%s1756_s7 + $0x38] sm:$0xff] }
  0xef   :  { %909 = vmatprep.subr.bf16.mxu0 %v908_v4  ;;  %v334_v4 = vld [vmem:[%s1752_s3 + $0x360] sm:$0xff]  ;;  %v224_v36 = vmax.f32 %v218_v35, 0.0  ;;  %v630_v6 = vld [vmem:[%s1756_s7 + $0x50] sm:$0xff]  ;;  %v631_v8 = vld [vmem:[%s1756_s7 + $0x58] sm:$0xff] }
  0xf0   :  { %v225_v19 = vmax.f32 %v220_v13, 0.0  ;;  %v946_v9 = vpack.c.bf16 %v336_v5, %v334_v4  ;;  %v340_v13 = vld [vmem:[%s1752_s3 + $0x390] sm:$0xff]  ;;  %v629_v4 = vld [vmem:[%s1756_s7 + $0x48] sm:$0xff] }
  0xf2   :  { %911 = vmatpush1.bf16.msra.mxu0 %v910_v12  ;;  %501 = vmatprep.mubr.f32.mxu0 %v225_v19  ;;  %v338_v12 = vld [vmem:[%s1752_s3 + $0x380] sm:$0xff]  ;;  %v344_v19 = vld [vmem:[%s1752_s3 + $0x3b0] sm:$0xff] }
  0xf3   :  { %913 = vmatprep.subr.bf16.mxu0 %v912_v14  ;;  %v343_v14 = vld [vmem:[%s1752_s3 + $0x3a8] sm:$0xff]  ;;  %v950_v16 = vpack.c.bf16 %v340_v13, %v338_v12  ;;  %v954_v22 = vpack.c.bf16 %v344_v19, %v342_v18  ;;  %v731_v18 = vld [vmem:[%s1755_s6] ss:$0 sm:$0xff] }
  0xf4   :  { %v952_v17 = vpack.c.bf16 %v345_v15, %v343_v14  ;;  %v633_v12 = vld [vmem:[%s1756_s7 + $0x68] sm:$0xff]  ;;  %v634_v14 = vld [vmem:[%s1756_s7 + $0x70] sm:$0xff]  ;;  %v635_v15 = vld [vmem:[%s1756_s7 + $0x78] sm:$0xff] }
  0xf6   :  { %915 = vmatpush1.bf16.msra.mxu0 %v914_v20  ;;  %v347_v20 = vld [vmem:[%s1752_s3 + $0x3c8] sm:$0xff] }
  0xf7   :  { %917 = vmatprep.subr.bf16.mxu0 %v916_v21  ;;  %v349_v21 = vld [vmem:[%s1752_s3 + $0x3d8] sm:$0xff] }
  0xf8   :  { %v956_v24 = vpack.c.bf16 %v349_v21, %v347_v20 }
  0xfa   :  { %919 = vmatpush1.bf16.msra.mxu0 %v918_v26  ;;  %v348_v26 = vld [vmem:[%s1752_s3 + $0x3d0] sm:$0xff] }
  0xfb   :  { %921 = vmatprep.subr.bf16.mxu0 %v920_v27  ;;  %v351_v27 = vld [vmem:[%s1752_s3 + $0x3e8] sm:$0xff]  ;;  %v958_v29 = vpack.c.bf16 %v348_v26, %v346_v25 }
  0xfc   :  { %v960_v31 = vpack.c.bf16 %v353_v28, %v351_v27 }
  0xfe   :  { %923 = vmatpush1.bf16.msra.mxu0 %v922_v32  ;;  %v350_v32 = vld [vmem:[%s1752_s3 + $0x3e0] sm:$0xff] }
  0xff   :  { %925 = vmatprep.subr.bf16.mxu0 %v924_v33  ;;  %v352_v33 = vld [vmem:[%s1752_s3 + $0x3f0] sm:$0xff] }
 0x100   :  { %v962_v34 = vpack.c.bf16 %v352_v33, %v350_v32 }
 0x102   :  { %927 = vmatpush1.bf16.msra.mxu0 %v926_v38  ;;  %v990_v38 = vpack.c.bf16 %v523_v37, %v522_v45 }
 0x103   :  { %929 = vmatprep.subr.bf16.mxu0 %v928_v39  ;;  %v540_v39 = vld [vmem:[%s1754_s5 + $0xf0] sm:$0xff] }
 0x104   :  { %991 = vmatpush3.bf16.msra.mxu1 %v990_v38  ;;  %v992_v40 = vpack.c.bf16 %v541_v10, %v540_v39 }
 0x106   :  { %931 = vmatpush1.bf16.msra.mxu0 %v930_v48  ;;  %993 = vmatprep.subr.bf16.mxu1 %v992_v40  ;;  %v1053_v48 = vmov 0.0|0.0  }
 0x107   :  { %933 = vmatprep.subr.bf16.mxu0 %v932_v49  ;;  %v354_v49 = vld [vmem:[%s1753_s4] sm:$0x3] }
 0x108   :  { %995 = vmatpush3.bf16.msra.mxu1 %v994_v47  ;;  %v359_v50 = vrot.slane %v354_v49, %v58_v44  ;;  %v363_v51 = vrot.slane %v354_v49, %v62_v46  ;;  %v623_v44 = vld [vmem:[%s1756_s7 + $0x18] sm:$0xff] }
 0x109   :  { %996 = vmatprep.subr.bf16.mxu1 %v1053_v48  ;;  %v1000_v46 = vpack.c.bf16 %v623_v44, %v622_v43 }
 0x10a   :  { %935 = vmatpush1.bf16.msra.mxu0 %v934_v54 }
 0x10b   :  { %937 = vmatprep.subr.bf16.mxu0 %v936_v55  ;;  %v620_v55 = vld [vmem:[%s1756_s7] sm:$0xff] }
 0x10c   :  { %v997_v59 = vpack.c.bf16 %v621_v56, %v620_v55 }
 0x10e   :  { %939 = vmatpush1.bf16.msra.mxu0 %v938_v60 }
 0x10f   :  { %941 = vmatprep.subr.bf16.mxu0 %v940_v61  ;;  %v624_v61 = vld [vmem:[%s1756_s7 + $0x20] sm:$0xff] }
 0x110   :  { %v1003_v63 = vpack.c.bf16 %v625_v62, %v624_v61 }
 0x112   :  { %943 = vmatpush1.bf16.msra.mxu0 %v942_v2  ;;  %v1006_v2 = vpack.c.bf16 %v627_v1, %v626_v0 }
 0x113   :  { %945 = vmatprep.subr.bf16.mxu0 %v944_v3  ;;  %v628_v3 = vld [vmem:[%s1756_s7 + $0x40] sm:$0xff] }
 0x114   :  { %v1009_v5 = vpack.c.bf16 %v629_v4, %v628_v3 }
 0x116   :  { %947 = vmatpush1.bf16.msra.mxu0 %v946_v9  ;;  %v1012_v9 = vpack.c.bf16 %v631_v8, %v630_v6 }
 0x117   :  { %949 = vmatprep.subr.bf16.mxu0 %v948_v11  ;;  %v632_v11 = vld [vmem:[%s1756_s7 + $0x60] sm:$0xff]  ;;  %s1055_s7 = smov [#allocation2]  }
 0x118   :  { %v1015_v13 = vpack.c.bf16 %v633_v12, %v632_v11  ;;  %s721_s12 = sshll.u32 %s1055_s7, 4  ;;  %s722_s12 = int_to_ptr.vmem [resolvable:$true] %s721_s12 }
 0x119   :  { %s1028_s13 = scalar_lea.vmem %s722_s12, 32  ;;  %p1033_p1 = scmp.lt.s32.totalorder %s722_s12, %s722_s12 }
 0x11a   :  { %951 = vmatpush1.bf16.msra.mxu0 %v950_v16  ;;  %v1018_v16 = vpack.c.bf16 %v635_v15, %v634_v14  ;;  %p1029_p0 = scmp.ne.s32.totalorder %s722_s12, %s1028_s13  ;;  %p1034_p2 = scmp.lt.s32.totalorder %s1028_s13, %s1028_s13 }
 0x11b   :  { %953 = vmatprep.subr.bf16.mxu0 %v952_v17 }
 0x11c   :  { %p1035_p3 = por %p1034_p2, %p1033_p1 }
 0x11e   :  { %955 = vmatpush1.bf16.msra.mxu0 %v954_v22  ;;  %p1036_p4 = pnand %p1035_p3, %p1029_p0 }
 0x11f   :  { %957 = vmatprep.subr.bf16.mxu0 %v956_v24 }
 0x122   :  { %959 = vmatpush1.bf16.msra.mxu0 %v958_v29 }
 0x123   :  { %961 = vmatprep.subr.bf16.mxu0 %v960_v31 }
 0x126   :  { %963 = vmatpush1.bf16.msra.mxu0 %v962_v34 }
 0x129   :  { %502 = vmatmul.mubr.f32.vlgmr.msra.gmra.mrb[0].mxu0 %v224_v36 }
 0x1fc   :  { %v503_v52 = vpop.f32.mrb[0].mxu0 }
 0x1fd   :  { %v1020_v53 = vadd.f32 %v503_v52, %v359_v50  ;;  %v505_v54 = vpop.f32.mrb[1].mxu0 }
 0x1fe   :  { %v1021_v57 = vadd.f32 %v505_v54, %v363_v51 }
 0x1ff   :  { %v508_v60 = vmax.f32 %v1020_v53, 0.0 }
 0x200   :  { %v509_v58 = vmax.f32 %v1021_v57, 0.0 }
 0x202   :  { %613 = vmatprep.mubr.f32.mxu1 %v509_v58 }
 0x203   :  { %614 = vmatmul.mubr.f32.vlgmr.msra.gmra.mrb[4].mxu1 %v508_v60 }
 0x204   :  { %998 = vmatpush3.bf16.msra.mxu1 %v997_v59  ;;  %817 = vmatprep.mubr.msk.f32.mxu1 %vm1054_vm1, %v1052_v7 }
 0x205   :  { %999 = vmatprep.subr.bf16.mxu1 %v1053_v48 }
 0x208   :  { %1001 = vmatpush3.bf16.msra.mxu1 %v1000_v46 }
 0x209   :  { %1002 = vmatprep.subr.bf16.mxu1 %v1053_v48 }
 0x20c   :  { %1004 = vmatpush3.bf16.msra.mxu1 %v1003_v63 }
 0x20d   :  { %1005 = vmatprep.subr.bf16.mxu1 %v1053_v48 }
 0x210   :  { %1007 = vmatpush3.bf16.msra.mxu1 %v1006_v2 }
 0x211   :  { %1008 = vmatprep.subr.bf16.mxu1 %v1053_v48 }
 0x214   :  { %1010 = vmatpush3.bf16.msra.mxu1 %v1009_v5 }
 0x215   :  { %1011 = vmatprep.subr.bf16.mxu1 %v1053_v48 }
 0x218   :  { %1013 = vmatpush3.bf16.msra.mxu1 %v1012_v9 }
 0x219   :  { %1014 = vmatprep.subr.bf16.mxu1 %v1053_v48 }
 0x21c   :  { %1016 = vmatpush3.bf16.msra.mxu1 %v1015_v13 }
 0x21d   :  { %1017 = vmatprep.subr.bf16.mxu1 %v1053_v48 }
 0x220   :  { %1019 = vmatpush3.bf16.msra.mxu1 %v1018_v16 }
 0x2d6   :  { %v765_v17 = vpop.f32.mrb[4].mxu1 }
 0x2d7   :  { %v766_v19 = vpop.f32.mrb[5].mxu1 }
 0x2d8   :  { %v767_v20 = vadd.f32 %v766_v19, %v765_v17 }
 0x2da   :  { %v616_v21 = vadd.f32 %v767_v20, %v731_v18 }
 0x2dc   :  { %v619_v22 = vmax.f32 %v616_v21, 0.0 }
 0x2de   :  { %818 = vmatmul.mubr.f32.vlgmr.msra.gmra.mrb[6].mxu1 %v619_v22 }
 0x3b1   :  { %v709_v24 = vpop.f32.mrb[6].mxu1 }
 0x3b2   :  { %v710_v25 = vadd.f32 %v732_v23, %v709_v24  ;;  %v819_v7 = vpop.f32.mrb[7].mxu1 }
 0x3b4   :  { %714 = vst.msk [vmem:[#allocation2] sm:$0x3] %vm713_vm2, %v710_v25 }
 0x3b5   :  { %1039 = shalt.err (!%p1036_p4)
}
 0x3b6   :  { %s1040_s2 = scalar_lea.hbm %s1758_s9, 32 }
 0x3b7   :  { %p1041_p5 = scmp.ne.s32.totalorder %s1758_s9, %s1040_s2  ;;  %p1044_p6 = scmp.lt.u32.totalorder %s1040_s2, %s1758_s9 }
 0x3b9   :  { %p1046_p7 = pnand %p1044_p6, %p1041_p5 }
 0x3bb   :  { %1049 = shalt.err (!%p1046_p7)
}
 0x3bc   :  { %724 = dma.vmem_to_hbm [thread:$0]  %s722_s12, 32, %s1758_s9, [#allocation3]  }
 0x3bd   :  { %1050 = dma.done.wait [#allocation3], 32  }
 0x3be   :  { %1051 = vsyncadd [#allocation3], 4294967264 }
 0x3bf   :  { %728 = vsyncpa [#allocation3], 1 }

</bundles_post_ra>
